<compile_context>
chip_gen: v5e
topology: v5e:2x2
jax: 0.10.0
libtpu: 0.0.40
codegen_flags: <defaults>
</compile_context>

<pallas_src>
import math
import functools

import jax
import jax.numpy as jnp
from jax import lax
from jax.experimental import pallas as pl
from jax.experimental.pallas import tpu as pltpu


_VMEM_LIMIT_BYTES = 48 * 1024 * 1024   # explicit scoped-VMEM cap (fits v7x's 64 MiB)
_MASK_FILL = -1e18                     # same fill value as torch masked_fill
_RUNNING_MAX_INIT = -1e30              # finite "minus infinity" for online softmax


def _pick_tile(dim, pref, min_tile):
    """Largest power-of-two fraction of `pref` that divides `dim`, else full dim."""
    t = pref
    while t >= min_tile:
        if dim >= t and dim % t == 0:
            return t
        t //= 2
    return dim


def _pick_head_group(head_count, dph, target=256):
    """Number of heads handled per grid step so the head slab is ~target wide."""
    for g in range(head_count, 0, -1):
        if head_count % g == 0 and g * dph <= target:
            return g
    return 1


# ----------------------------------------------------------------------------
# Kernel 1: Q/K/V projection, head split fused into the output BlockSpec.
#   x:(B, L, K) @ w:(H, K, dph)  ->  (B, H, L, dph)
# ----------------------------------------------------------------------------
def _proj_heads_kernel(x_ref, w_ref, o_ref, acc_ref, *, head_group):
    kk = pl.program_id(3)

    @pl.when(kk == 0)
    def _():
        acc_ref[...] = jnp.zeros_like(acc_ref)

    x = x_ref[0]                                          # (tm, tk)
    for g in range(head_group):                           # static unroll over heads
        acc_ref[g] = acc_ref[g] + jnp.dot(
            x, w_ref[g], preferred_element_type=jnp.float32)

    @pl.when(kk == pl.num_programs(3) - 1)
    def _():
        o_ref[0] = acc_ref[...].astype(o_ref.dtype)


def project_heads(x, w_heads, *, tm_pref=256, tk_pref=512, head_target=256):
    B, L, K = x.shape
    H, _, dph = w_heads.shape
    tm = _pick_tile(L, tm_pref, 8)
    tk = _pick_tile(K, tk_pref, 128)
    g = _pick_head_group(H, dph, head_target)
    grid = (B, L // tm, H // g, K // tk)
    kernel = functools.partial(_proj_heads_kernel, head_group=g)
    return pl.pallas_call(
        kernel,
        out_shape=jax.ShapeDtypeStruct((B, H, L, dph), x.dtype),
        grid_spec=pltpu.PrefetchScalarGridSpec(
            num_scalar_prefetch=0,
            grid=grid,
            in_specs=[
                pl.BlockSpec((1, tm, tk), lambda b, i, j, k: (b, i, k)),
                pl.BlockSpec((g, tk, dph), lambda b, i, j, k: (j, k, 0)),
            ],
            out_specs=pl.BlockSpec((1, g, tm, dph), lambda b, i, j, k: (b, j, i, 0)),
            scratch_shapes=[pltpu.VMEM((g, tm, dph), jnp.float32)],
        ),
        compiler_params=pltpu.CompilerParams(
            dimension_semantics=("parallel", "parallel", "parallel", "arbitrary"),
            vmem_limit_bytes=_VMEM_LIMIT_BYTES,
        ),
    )(x, w_heads)


# ----------------------------------------------------------------------------
# Kernel 2: flash attention (online softmax, Sk streamed as reduction axis).
#   q,k,v:(B, H, L, dph)  ->  ctx:(B, H, Lq, dph)
# ----------------------------------------------------------------------------
def _flash_attention_kernel(*refs, masked):
    if masked:
        q_ref, k_ref, v_ref, mask_ref, o_ref, m_scr, l_scr, acc_scr = refs
    else:
        q_ref, k_ref, v_ref, o_ref, m_scr, l_scr, acc_scr = refs
        mask_ref = None
    ki = pl.program_id(3)

    @pl.when(ki == 0)
    def _():
        m_scr[...] = jnp.full_like(m_scr, _RUNNING_MAX_INIT)
        l_scr[...] = jnp.zeros_like(l_scr)
        acc_scr[...] = jnp.zeros_like(acc_scr)

    q = q_ref[0, 0]                                       # (tq, dph), pre-scaled
    k = k_ref[0, 0]                                       # (tk, dph)
    v = v_ref[0, 0]                                       # (tk, dph)
    s = lax.dot_general(q, k, (((1,), (1,)), ((), ())),
                        preferred_element_type=jnp.float32)   # (tq, tk)
    if masked:
        s = jnp.where(mask_ref[0] != 0, jnp.float32(_MASK_FILL), s)

    m_prev = m_scr[...]                                   # (tq, 1)
    m_new = jnp.maximum(m_prev, jnp.max(s, axis=-1, keepdims=True))
    alpha = jnp.exp(m_prev - m_new)                       # EUP
    p = jnp.exp(s - m_new)                                # EUP
    l_scr[...] = alpha * l_scr[...] + jnp.sum(p, axis=-1, keepdims=True)
    acc_scr[...] = alpha * acc_scr[...] + jnp.dot(
        p.astype(v.dtype), v, preferred_element_type=jnp.float32)
    m_scr[...] = m_new

    # TODO(synk): dropout on the attention probabilities is identity at
    # inference and is intentionally not implemented.

    @pl.when(ki == pl.num_programs(3) - 1)
    def _():
        inv_l = pl.reciprocal(l_scr[...], approx=True)
        o_ref[0, 0] = (acc_scr[...] * inv_l).astype(o_ref.dtype)


def flash_attention(q_up, k_up, v_up, mask=None, *, tq_pref=256, tk_pref=256):
    B, H, Lq, dph = q_up.shape
    Lk = k_up.shape[2]
    tq = _pick_tile(Lq, tq_pref, 8)
    tk = _pick_tile(Lk, tk_pref, 128)
    grid = (B, H, Lq // tq, Lk // tk)
    masked = mask is not None
    kernel = functools.partial(_flash_attention_kernel, masked=masked)

    in_specs = [
        pl.BlockSpec((1, 1, tq, dph), lambda b, h, qi, ki: (b, h, qi, 0)),
        pl.BlockSpec((1, 1, tk, dph), lambda b, h, qi, ki: (b, h, ki, 0)),
        pl.BlockSpec((1, 1, tk, dph), lambda b, h, qi, ki: (b, h, ki, 0)),
    ]
    args = [q_up, k_up, v_up]
    if masked:
        in_specs.append(pl.BlockSpec((1, tq, tk), lambda b, h, qi, ki: (b, qi, ki)))
        args.append(mask)

    return pl.pallas_call(
        kernel,
        out_shape=jax.ShapeDtypeStruct((B, H, Lq, dph), q_up.dtype),
        grid_spec=pltpu.PrefetchScalarGridSpec(
            num_scalar_prefetch=0,
            grid=grid,
            in_specs=in_specs,
            out_specs=pl.BlockSpec((1, 1, tq, dph), lambda b, h, qi, ki: (b, h, qi, 0)),
            scratch_shapes=[
                pltpu.VMEM((tq, 1), jnp.float32),     # running max
                pltpu.VMEM((tq, 1), jnp.float32),     # running denominator
                pltpu.VMEM((tq, dph), jnp.float32),   # running context accumulator
            ],
        ),
        compiler_params=pltpu.CompilerParams(
            dimension_semantics=("parallel", "parallel", "parallel", "arbitrary"),
            vmem_limit_bytes=_VMEM_LIMIT_BYTES,
        ),
    )(*args)


# ----------------------------------------------------------------------------
# Kernel 3: final linear, head merge fused into the reduction grid axis.
#   ctx:(B, H, L, dph) @ w:(H, dph, N)  ->  (B, L, N)   (lane-dense output)
# ----------------------------------------------------------------------------
def _merge_heads_kernel(ctx_ref, w_ref, o_ref, acc_ref, *, head_group):
    hh = pl.program_id(3)

    @pl.when(hh == 0)
    def _():
        acc_ref[...] = jnp.zeros_like(acc_ref)

    for g in range(head_group):                           # static unroll over heads
        acc_ref[...] += jnp.dot(
            ctx_ref[0, g], w_ref[g], preferred_element_type=jnp.float32)

    @pl.when(hh == pl.num_programs(3) - 1)
    def _():
        o_ref[0] = acc_ref[...].astype(o_ref.dtype)


def merge_heads_linear(ctx, w_heads, *, tm_pref=256, tn_pref=256, head_target=256):
    B, H, L, dph = ctx.shape
    N = w_heads.shape[2]
    tm = _pick_tile(L, tm_pref, 8)
    tn = _pick_tile(N, tn_pref, 128)
    g = _pick_head_group(H, dph, head_target)
    grid = (B, L // tm, N // tn, H // g)
    kernel = functools.partial(_merge_heads_kernel, head_group=g)
    return pl.pallas_call(
        kernel,
        out_shape=jax.ShapeDtypeStruct((B, L, N), ctx.dtype),
        grid_spec=pltpu.PrefetchScalarGridSpec(
            num_scalar_prefetch=0,
            grid=grid,
            in_specs=[
                pl.BlockSpec((1, g, tm, dph), lambda b, i, j, h: (b, h, i, 0)),
                pl.BlockSpec((g, dph, tn), lambda b, i, j, h: (h, 0, j)),
            ],
            out_specs=pl.BlockSpec((1, tm, tn), lambda b, i, j, h: (b, i, j)),
            scratch_shapes=[pltpu.VMEM((tm, tn), jnp.float32)],
        ),
        compiler_params=pltpu.CompilerParams(
            dimension_semantics=("parallel", "parallel", "parallel", "arbitrary"),
            vmem_limit_bytes=_VMEM_LIMIT_BYTES,
        ),
    )(ctx, w_heads)


# ----------------------------------------------------------------------------
# Kernel 4: head-0 attention probabilities only (for top_attn).
#   Recomputed for just one head instead of materializing (B,H,Sq,Sk).
# ----------------------------------------------------------------------------
def _head0_probs_kernel(*refs, masked):
    if masked:
        q_ref, k_ref, mask_ref, o_ref = refs
    else:
        q_ref, k_ref, o_ref = refs
        mask_ref = None
    q = q_ref[0, 0]                                       # (tq, dph), pre-scaled
    k = k_ref[0, 0]                                       # (Lk, dph)
    s = lax.dot_general(q, k, (((1,), (1,)), ((), ())),
                        preferred_element_type=jnp.float32)   # (tq, Lk)
    if masked:
        s = jnp.where(mask_ref[0] != 0, jnp.float32(_MASK_FILL), s)
    m = jnp.max(s, axis=-1, keepdims=True)
    e = jnp.exp(s - m)
    denom = jnp.sum(e, axis=-1, keepdims=True)
    o_ref[0] = (e * pl.reciprocal(denom, approx=False)).astype(o_ref.dtype)


def head0_attention_probs(q_up, k_up, mask=None, *, tq_pref=256):
    B, H, Lq, dph = q_up.shape
    Lk = k_up.shape[2]
    tq = _pick_tile(Lq, tq_pref, 8)
    grid = (B, Lq // tq)
    masked = mask is not None
    kernel = functools.partial(_head0_probs_kernel, masked=masked)

    in_specs = [
        pl.BlockSpec((1, 1, tq, dph), lambda b, qi: (b, 0, qi, 0)),
        pl.BlockSpec((1, 1, Lk, dph), lambda b, qi: (b, 0, 0, 0)),
    ]
    args = [q_up, k_up]
    if masked:
        in_specs.append(pl.BlockSpec((1, tq, Lk), lambda b, qi: (b, qi, 0)))
        args.append(mask)

    return pl.pallas_call(
        kernel,
        out_shape=jax.ShapeDtypeStruct((B, Lq, Lk), jnp.float32),
        grid_spec=pltpu.PrefetchScalarGridSpec(
            num_scalar_prefetch=0,
            grid=grid,
            in_specs=in_specs,
            out_specs=pl.BlockSpec((1, tq, Lk), lambda b, qi: (b, qi, 0)),
        ),
        compiler_params=pltpu.CompilerParams(
            dimension_semantics=("parallel", "parallel"),
            vmem_limit_bytes=_VMEM_LIMIT_BYTES,
        ),
    )(*args)


# ----------------------------------------------------------------------------
# Module wrapper (mirrors MultiHeadedAttention.forward)
# ----------------------------------------------------------------------------
class MultiHeadedAttentionPallas:
    def __init__(self, k_dim, v_dim, model_dim, head_count, key,
                 dtype=jnp.float32):
        assert model_dim % head_count == 0
        self.dim_per_head = model_dim // head_count
        assert k_dim == self.dim_per_head and v_dim == self.dim_per_head
        self.model_dim = model_dim
        self.head_count = head_count
        dph = self.dim_per_head

        k1, k2, k3, k4 = jax.random.split(key, 4)
        init = lambda k: 0.02 * jax.random.normal(
            k, (model_dim, model_dim), dtype=jnp.float32
        )  # nn.Linear weight shape: (out_features, in_features)
        self.w_keys = init(k1)
        self.w_values = init(k2)
        self.w_query = init(k3)
        self.w_final = init(k4)

        # Pre-packed kernel weights (computed ONCE at init, not per call):
        #   W.T reshaped to per-head slabs (H, K, dph); query weight also
        #   carries the folded 1 / sqrt(dph) scale.
        def pack_proj(w, scale=1.0):
            wt = w.T.astype(dtype) * scale                    # (K, H*dph)
            return wt.reshape(model_dim, head_count, dph).transpose(1, 0, 2)

        self.wk_heads = pack_proj(self.w_keys)
        self.wv_heads = pack_proj(self.w_values)
        self.wq_heads = pack_proj(self.w_query, 1.0 / math.sqrt(dph))
        # Final linear: W.T (Dm, Dm) split along its rows per head -> (H, dph, Dm)
        self.wf_heads = self.w_final.T.astype(dtype).reshape(
            head_count, dph, model_dim)
        self.dtype = dtype

    def __call__(self, query, key, value, attn_mask=None):
        query = query.astype(self.dtype)
        key = key.astype(self.dtype)
        value = value.astype(self.dtype)

        # Projections write directly in (B, H, L, dph) layout; the query
        # projection is already scaled by 1/sqrt(dph).
        q_up = project_heads(query, self.wq_heads)
        k_up = project_heads(key, self.wk_heads)
        v_up = project_heads(value, self.wv_heads)

        # Mask-free kernel variant when there is no mask (no dummy mask read).
        mask = None if attn_mask is None else attn_mask.astype(jnp.int8)

        ctx = flash_attention(q_up, k_up, v_up, mask)         # (B, H, Lq, dph)
        output = merge_heads_linear(ctx, self.wf_heads)       # (B, Lq, Dm)
        top_attn = head0_attention_probs(q_up, k_up, mask)    # (B, Lq, Lk)
        return output.astype(jnp.float32), top_attn


# ----------------------------------------------------------------------------
# Pure-JAX reference (for verification only)
# ----------------------------------------------------------------------------
def reference_forward(mha, query, key, value, attn_mask=None):
    B, Lq, D = query.shape
    H, dph = mha.head_count, mha.dim_per_head

    def proj(x, w):
        return (x @ w.T).reshape(B, -1, H, dph).transpose(0, 2, 1, 3)

    k_up = proj(key, mha.w_keys)
    v_up = proj(value, mha.w_values)
    q_up = proj(query, mha.w_query) / math.sqrt(dph)
    scores = jnp.einsum("bhqd,bhkd->bhqk", q_up, k_up)
    if attn_mask is not None:
        scores = jnp.where(attn_mask[:, None, :, :] != 0, _MASK_FILL, scores)
    attn = jax.nn.softmax(scores, axis=-1)
    ctx = jnp.einsum("bhqk,bhkd->bhqd", attn, v_up)
    context = ctx.transpose(0, 2, 1, 3).reshape(B, Lq, H * dph)
    out = context @ mha.w_final.T
    return out, attn[:, 0, :, :]


# ----------------------------------------------------------------------------
if __name__ == "__main__":
    B, L, MODEL_DIM, HEADS = 2, 8, 32, 4
    DPH = MODEL_DIM // HEADS

    root = jax.random.PRNGKey(0)
    kq, kk, kv, kw = jax.random.split(root, 4)
    query = jax.random.normal(kq, (B, L, MODEL_DIM), dtype=jnp.float32)
    key = jax.random.normal(kk, (B, L, MODEL_DIM), dtype=jnp.float32)
    value = jax.random.normal(kv, (B, L, MODEL_DIM), dtype=jnp.float32)

    mha = MultiHeadedAttentionPallas(DPH, DPH, MODEL_DIM, HEADS, key=kw)

    # ---- no-mask path (mask-free kernel variants) ----
    output, top_attn = mha(query, key, value, attn_mask=None)
    output = jax.block_until_ready(output)
    top_attn = jax.block_until_ready(top_attn)

    out_ref, attn_ref = reference_forward(mha, query, key, value, attn_mask=None)
    assert output.shape == (B, L, MODEL_DIM)
    assert top_attn.shape == (B, L, L)
    assert jnp.allclose(output, out_ref, atol=1e-4, rtol=1e-3)
    assert jnp.allclose(top_attn, attn_ref, atol=1e-4, rtol=1e-3)

    # ---- masked path (causal-style mask; 1 = masked out, like masked_fill) ----
    causal = (jnp.arange(L)[None, :] > jnp.arange(L)[:, None]).astype(jnp.int32)
    attn_mask = jnp.broadcast_to(causal, (B, L, L))
    output_m, top_attn_m = mha(query, key, value, attn_mask=attn_mask)
    output_m = jax.block_until_ready(output_m)
    top_attn_m = jax.block_until_ready(top_attn_m)

    out_ref_m, attn_ref_m = reference_forward(
        mha, query, key, value, attn_mask=attn_mask)
    assert jnp.allclose(output_m, out_ref_m, atol=1e-4, rtol=1e-3)
    assert jnp.allclose(top_attn_m, attn_ref_m, atol=1e-4, rtol=1e-3)

    print("KERNEL_OK")
</pallas_src>

<mosaic_0001>
module attributes {stable_mosaic.version = 11 : i64} {
  func.func @_proj_heads_kernel(%arg0: i32, %arg1: i32, %arg2: i32, %arg3: i32, %arg4: memref<1x8x32xf32, #tpu.memory_space<vmem>>, %arg5: memref<4x32x8xf32, #tpu.memory_space<vmem>>, %arg6: memref<1x4x8x8xf32, #tpu.memory_space<vmem>>, %arg7: memref<4x8x8xf32, #tpu.memory_space<vmem>>) attributes {dimension_semantics = [#tpu.dimension_semantics<parallel>, #tpu.dimension_semantics<parallel>, #tpu.dimension_semantics<parallel>, #tpu.dimension_semantics<arbitrary>], iteration_bounds = array<i64: 2, 1, 1, 1>, scalar_prefetch = 0 : i64, scratch_operands = 1 : i64, tpu.core_type = #tpu.core_type<tc>, window_params = [{transform_indices = @transform_0, window_bounds = array<i64: 1, 8, 32>}, {transform_indices = @transform_1, window_bounds = array<i64: 4, 32, 8>}, {transform_indices = @transform_2, window_bounds = array<i64: 1, 4, 8, 8>}]} {
    %c0_i32 = arith.constant 0 : i32
    %0 = arith.cmpi eq, %arg3, %c0_i32 : i32
    %1 = arith.extui %0 : i1 to i32
    %c0_i32_0 = arith.constant 0 : i32
    %2 = arith.cmpi ne, %1, %c0_i32_0 : i32
    scf.if %2 {
      %cst_41 = arith.constant 0.000000e+00 : f32
      %44 = vector.broadcast %cst_41 : f32 to vector<4x8x8xf32>
      %c0_42 = arith.constant 0 : index
      %c0_43 = arith.constant 0 : index
      %c0_44 = arith.constant 0 : index
      %45 = vector.load %arg7[%c0_42, %c0_43, %c0_44] : memref<4x8x8xf32, #tpu.memory_space<vmem>>, vector<4x8x8xf32>
      tpu.vector_store %arg7[%c0_42, %c0_43, %c0_44], %44 {strides = array<i32>} : memref<4x8x8xf32, #tpu.memory_space<vmem>>, vector<4x8x8xf32>,
    } else {
    }
    %c0 = arith.constant 0 : index
    %c0_1 = arith.constant 0 : index
    %c0_2 = arith.constant 0 : index
    %3 = vector.load %arg4[%c0, %c0_1, %c0_2] : memref<1x8x32xf32, #tpu.memory_space<vmem>>, vector<1x8x32xf32>
    %4 = vector.shape_cast %3 : vector<1x8x32xf32> to vector<8x32xf32>
    %c0_3 = arith.constant 0 : index
    %c0_4 = arith.constant 0 : index
    %c0_5 = arith.constant 0 : index
    %5 = vector.load %arg7[%c0_3, %c0_4, %c0_5] : memref<4x8x8xf32, #tpu.memory_space<vmem>>, vector<1x8x8xf32>
    %6 = vector.shape_cast %5 : vector<1x8x8xf32> to vector<8x8xf32>
    %c0_6 = arith.constant 0 : index
    %c0_7 = arith.constant 0 : index
    %c0_8 = arith.constant 0 : index
    %7 = vector.load %arg5[%c0_6, %c0_7, %c0_8] : memref<4x32x8xf32, #tpu.memory_space<vmem>>, vector<1x32x8xf32>
    %8 = vector.shape_cast %7 : vector<1x32x8xf32> to vector<32x8xf32>
    %cst = arith.constant dense<0.000000e+00> : vector<8x8xf32>
    %9 = tpu.matmul %4, %8, %cst {dimension_numbers = #tpu.dot_dimension_numbers<[1], [0], [0], [1], [0, 0, 1, 1], [], []>} : vector<8x32xf32>, vector<32x8xf32>, vector<8x8xf32> -> vector<8x8xf32>
    %10 = arith.addf %6, %9 : vector<8x8xf32>
    %c0_9 = arith.constant 0 : index
    %c0_10 = arith.constant 0 : index
    %c0_11 = arith.constant 0 : index
    %11 = vector.load %arg7[%c0_9, %c0_10, %c0_11] : memref<4x8x8xf32, #tpu.memory_space<vmem>>, vector<1x8x8xf32>
    %12 = vector.shape_cast %11 : vector<1x8x8xf32> to vector<8x8xf32>
    %13 = vector.shape_cast %10 : vector<8x8xf32> to vector<1x8x8xf32>
    tpu.vector_store %arg7[%c0_9, %c0_10, %c0_11], %13 {strides = array<i32>} : memref<4x8x8xf32, #tpu.memory_space<vmem>>, vector<1x8x8xf32>,
    %c1 = arith.constant 1 : index
    %c0_12 = arith.constant 0 : index
    %c0_13 = arith.constant 0 : index
    %14 = vector.load %arg7[%c1, %c0_12, %c0_13] : memref<4x8x8xf32, #tpu.memory_space<vmem>>, vector<1x8x8xf32>
    %15 = vector.shape_cast %14 : vector<1x8x8xf32> to vector<8x8xf32>
    %c1_14 = arith.constant 1 : index
    %c0_15 = arith.constant 0 : index
    %c0_16 = arith.constant 0 : index
    %16 = vector.load %arg5[%c1_14, %c0_15, %c0_16] : memref<4x32x8xf32, #tpu.memory_space<vmem>>, vector<1x32x8xf32>
    %17 = vector.shape_cast %16 : vector<1x32x8xf32> to vector<32x8xf32>
    %cst_17 = arith.constant dense<0.000000e+00> : vector<8x8xf32>
    %18 = tpu.matmul %4, %17, %cst_17 {dimension_numbers = #tpu.dot_dimension_numbers<[1], [0], [0], [1], [0, 0, 1, 1], [], []>} : vector<8x32xf32>, vector<32x8xf32>, vector<8x8xf32> -> vector<8x8xf32>
    %19 = arith.addf %15, %18 : vector<8x8xf32>
    %c1_18 = arith.constant 1 : index
    %c0_19 = arith.constant 0 : index
    %c0_20 = arith.constant 0 : index
    %20 = vector.load %arg7[%c1_18, %c0_19, %c0_20] : memref<4x8x8xf32, #tpu.memory_space<vmem>>, vector<1x8x8xf32>
    %21 = vector.shape_cast %20 : vector<1x8x8xf32> to vector<8x8xf32>
    %22 = vector.shape_cast %19 : vector<8x8xf32> to vector<1x8x8xf32>
    tpu.vector_store %arg7[%c1_18, %c0_19, %c0_20], %22 {strides = array<i32>} : memref<4x8x8xf32, #tpu.memory_space<vmem>>, vector<1x8x8xf32>,
    %c2 = arith.constant 2 : index
    %c0_21 = arith.constant 0 : index
    %c0_22 = arith.constant 0 : index
    %23 = vector.load %arg7[%c2, %c0_21, %c0_22] : memref<4x8x8xf32, #tpu.memory_space<vmem>>, vector<1x8x8xf32>
    %24 = vector.shape_cast %23 : vector<1x8x8xf32> to vector<8x8xf32>
    %c2_23 = arith.constant 2 : index
    %c0_24 = arith.constant 0 : index
    %c0_25 = arith.constant 0 : index
    %25 = vector.load %arg5[%c2_23, %c0_24, %c0_25] : memref<4x32x8xf32, #tpu.memory_space<vmem>>, vector<1x32x8xf32>
    %26 = vector.shape_cast %25 : vector<1x32x8xf32> to vector<32x8xf32>
    %cst_26 = arith.constant dense<0.000000e+00> : vector<8x8xf32>
    %27 = tpu.matmul %4, %26, %cst_26 {dimension_numbers = #tpu.dot_dimension_numbers<[1], [0], [0], [1], [0, 0, 1, 1], [], []>} : vector<8x32xf32>, vector<32x8xf32>, vector<8x8xf32> -> vector<8x8xf32>
    %28 = arith.addf %24, %27 : vector<8x8xf32>
    %c2_27 = arith.constant 2 : index
    %c0_28 = arith.constant 0 : index
    %c0_29 = arith.constant 0 : index
    %29 = vector.load %arg7[%c2_27, %c0_28, %c0_29] : memref<4x8x8xf32, #tpu.memory_space<vmem>>, vector<1x8x8xf32>
    %30 = vector.shape_cast %29 : vector<1x8x8xf32> to vector<8x8xf32>
    %31 = vector.shape_cast %28 : vector<8x8xf32> to vector<1x8x8xf32>
    tpu.vector_store %arg7[%c2_27, %c0_28, %c0_29], %31 {strides = array<i32>} : memref<4x8x8xf32, #tpu.memory_space<vmem>>, vector<1x8x8xf32>,
    %c3 = arith.constant 3 : index
    %c0_30 = arith.constant 0 : index
    %c0_31 = arith.constant 0 : index
    %32 = vector.load %arg7[%c3, %c0_30, %c0_31] : memref<4x8x8xf32, #tpu.memory_space<vmem>>, vector<1x8x8xf32>
    %33 = vector.shape_cast %32 : vector<1x8x8xf32> to vector<8x8xf32>
    %c3_32 = arith.constant 3 : index
    %c0_33 = arith.constant 0 : index
    %c0_34 = arith.constant 0 : index
    %34 = vector.load %arg5[%c3_32, %c0_33, %c0_34] : memref<4x32x8xf32, #tpu.memory_space<vmem>>, vector<1x32x8xf32>
    %35 = vector.shape_cast %34 : vector<1x32x8xf32> to vector<32x8xf32>
    %cst_35 = arith.constant dense<0.000000e+00> : vector<8x8xf32>
    %36 = tpu.matmul %4, %35, %cst_35 {dimension_numbers = #tpu.dot_dimension_numbers<[1], [0], [0], [1], [0, 0, 1, 1], [], []>} : vector<8x32xf32>, vector<32x8xf32>, vector<8x8xf32> -> vector<8x8xf32>
    %37 = arith.addf %33, %36 : vector<8x8xf32>
    %c3_36 = arith.constant 3 : index
    %c0_37 = arith.constant 0 : index
    %c0_38 = arith.constant 0 : index
    %38 = vector.load %arg7[%c3_36, %c0_37, %c0_38] : memref<4x8x8xf32, #tpu.memory_space<vmem>>, vector<1x8x8xf32>
    %39 = vector.shape_cast %38 : vector<1x8x8xf32> to vector<8x8xf32>
    %40 = vector.shape_cast %37 : vector<8x8xf32> to vector<1x8x8xf32>
    tpu.vector_store %arg7[%c3_36, %c0_37, %c0_38], %40 {strides = array<i32>} : memref<4x8x8xf32, #tpu.memory_space<vmem>>, vector<1x8x8xf32>,
    %c0_i32_39 = arith.constant 0 : i32
    %41 = arith.cmpi eq, %arg3, %c0_i32_39 : i32
    %42 = arith.extui %41 : i1 to i32
    %c0_i32_40 = arith.constant 0 : i32
    %43 = arith.cmpi ne, %42, %c0_i32_40 : i32
    scf.if %43 {
      %c0_41 = arith.constant 0 : index
      %c0_42 = arith.constant 0 : index
      %c0_43 = arith.constant 0 : index
      %44 = vector.load %arg7[%c0_41, %c0_42, %c0_43] : memref<4x8x8xf32, #tpu.memory_space<vmem>>, vector<4x8x8xf32>
      %c0_44 = arith.constant 0 : index
      %c0_45 = arith.constant 0 : index
      %c0_46 = arith.constant 0 : index
      %c0_47 = arith.constant 0 : index
      %45 = vector.load %arg6[%c0_44, %c0_45, %c0_46, %c0_47] : memref<1x4x8x8xf32, #tpu.memory_space<vmem>>, vector<1x4x8x8xf32>
      %46 = vector.shape_cast %45 : vector<1x4x8x8xf32> to vector<4x8x8xf32>
      %47 = vector.shape_cast %44 : vector<4x8x8xf32> to vector<1x4x8x8xf32>
      tpu.vector_store %arg6[%c0_44, %c0_45, %c0_46, %c0_47], %47 {strides = array<i32>} : memref<1x4x8x8xf32, #tpu.memory_space<vmem>>, vector<1x4x8x8xf32>,
    } else {
    }
    return
  }
  func.func @transform_0(%arg0: i32, %arg1: i32, %arg2: i32, %arg3: i32) -> (i32, i32, i32) {
    %c0_i32 = arith.constant 0 : i32
    return %arg0, %arg1, %arg3 : i32, i32, i32
  }
  func.func @transform_1(%arg0: i32, %arg1: i32, %arg2: i32, %arg3: i32) -> (i32, i32, i32) {
    %c0_i32 = arith.constant 0 : i32
    %c0_i32_0 = arith.constant 0 : i32
    return %arg2, %arg3, %c0_i32 : i32, i32, i32
  }
  func.func @transform_2(%arg0: i32, %arg1: i32, %arg2: i32, %arg3: i32) -> (i32, i32, i32, i32) {
    %c0_i32 = arith.constant 0 : i32
    %c0_i32_0 = arith.constant 0 : i32
    return %arg0, %arg2, %arg1, %c0_i32 : i32, i32, i32, i32
  }
}

</mosaic_0001>

<bundles_post_ra>
// kernel: tpu_custom_call.1
= control target key start
LH: loop header
LB: loop body
LE: loop exit
PB: predicated region body
PF: predicated region fallthrough
CT: control target
= control target key end

     0   :  { %7 = vsyncpa [#allocation4], 0  ;;  %s850_s0 = inlined_call_operand.vmem [shape: f32[2,8,32], index: 0, kind: input, shape index: {}]   ;;  %s851_s1 = inlined_call_operand.vmem [shape: f32[4,32,8], index: 1, kind: input, shape index: {}]   ;;  %s852_s2 = inlined_call_operand.hbm [shape: f32[2,4,8,8], index: 2, kind: output, shape index: {}]  }
   0x1   :  { %9 = vsyncpa [#allocation4 + $0x1], 0  ;;  %s685_s9 = smov 0   ;;  %s687_s10 = smov 0  }
   0x2   :  { %s689_s11 = smov 0   ;;  %s691_s12 = smov 0  }
   0x3   :  { %s693_s13 = smov 0   ;;  %s695_s14 = smov 0  }
   0x4 LB: > { %s499_s15 = sadd.s32 4294967295, %s665_s14   ;;  %s500_s16 = sadd.s32 4294967294, %s665_s14   ;;  %s665_s14 = sphi %s695_s14, %s15_s14   ;;  %s661_s13 = sphi %s693_s13, %s859_s13   ;;  %s657_s12 = sphi %s691_s12, %s858_s12   ;;  %s653_s11 = sphi %s689_s11, %s857_s11   ;;  %s649_s10 = sphi %s687_s10, %s856_s10   ;;  %s645_s9 = sphi %s685_s9, %s855_s9  }
   0x5   : > { %s41_s17 = sadd.s32 1, %s661_s13  ;;  %s110_s18 = sadd.s32 1, %s653_s11 }
   0x6   : > { %p43_p0 = scmp.ge.s32.totalorder %s41_s17, 2  ;;  %p120_p1 = scmp.ne.s32.totalorder %s653_s11, %s649_s10 }
   0x7   : > { %p121_p2 = scmp.eq.s32.totalorder %s499_s15, 1  ;;  %p126_p3 = scmp.ne.s32.totalorder %s649_s10, %s645_s9 }
   0x8   : > { %s861_s17 = smov (%p43_p0, %s41_s17), 0  ;;  %p127_p5 = scmp.eq.s32.totalorder %s500_s16, 1 }
   0x9   : > { %p725_p4 = por %p121_p2, %p120_p1  ;;  %s103_s20 = ssub.s32 %s661_s13, %s861_s17 }
   0xa   : > { %p504_p6 = scmp.ge.s32.totalorder %s665_s14, 1  ;;  %p108_p7 = scmp.eq.s32.totalorder %s103_s20, 0 }
   0xb   : > { %p732_p8 = por %p127_p5, %p126_p3  ;;  %p173_p9 = scmp.lt.s32.totalorder %s665_s14, 3 }
   0xc   : > { %s738_s22 = scalar_select %p108_p7, %s653_s11, %s110_s18  }
   0xd   : > { %p174_p10 = pnand %p504_p6, %p173_p9 }
   0xe   : > { %p210_p11 = scmp.lt.s32.totalorder (!%p174_p10), %s657_s12, 1  ;;  %s207_s24 = sand.u32 (!%p174_p10), 1, %s649_s10  }
   0xf   : > { %177 = sbr.rel (%p174_p10) target bundleno = 175 (0xaf), region = 28  ;;  %s505_s25 = sshll.u32 (!%p174_p10), %s207_s24, 5 }
  0x10   : > { %s528_s26 = sshll.u32 (!%p174_p10), %s657_s12, 5  ;;  %s607_s15 = scalar_lea.hbm (!%p174_p10), %s852_s2, 64 }
  0x11   : > { %s388_s29 = scalar_lea.hbm (!%p174_p10), %s852_s2, %s528_s26 }
  0x12   : > { %s391_s4 = sshll.u32 (!%p174_p10), %s388_s29, 4  ;;  %s392_s4 = int_to_ptr.hbm [resolvable:$true] %s391_s4 }
  0x14   : > { %v516_v0 = vld [vmem:[%s851_s1 + $0x58] sm:$0xff]  ;;  %v515_v2 = vld [vmem:[%s851_s1 + $0x50] sm:$0xff]  ;;  %vm237_vm0 = vcmask 64512   ;;  %v514_v4 = vld [vmem:[%s851_s1 + $0x48] sm:$0xff]  ;;  %s211_s18 = scalar_select %p210_p11, %s657_s12, 1  ;;  %v667_v8 = vmov 0.0  }
  0x15   : > { %v521_v1 = vld [vmem:[%s851_s1 + $0x78] sm:$0xff]  ;;  %323 = vmatpush.msra.mxu2 %v516_v0  ;;  %v520_v3 = vld [vmem:[%s851_s1 + $0x70] sm:$0xff]  ;;  %v519_v5 = vld [vmem:[%s851_s1 + $0x68] sm:$0xff]  ;;  %238 = vst.msk [vmem:[#allocation2] sm:$0xff] %vm237_vm0, %v667_v8  ;;  %vm248_vm1 = vcmask 261120   ;;  %s374_s12 = scalar_lea.sflag [#allocation4], %s207_s24 }
  0x16   : > { %352 = vmatpush.msra.mxu3 %v521_v1  ;;  %v247_v6 = vld [vmem:[%s851_s1 + $0x18] sm:$0xff]  ;;  %v246_v9 = vld [vmem:[%s851_s1 + $0x10] sm:$0xff]  ;;  %239 = vst.msk [vmem:[#allocation2 + $0x8] sm:$0xff] %vm237_vm0, %v667_v8  ;;  %v513_v11 = vld [vmem:[%s851_s1 + $0x40] sm:$0xff]  ;;  %s506_s30 = sshll.u32 %s211_s18, 3 }
  0x17   : > { %v511_v7 = vld [vmem:[%s851_s1 + $0x38] sm:$0xff]  ;;  %324 = vmatpush.msra.mxu2 %v515_v2  ;;  %v510_v10 = vld [vmem:[%s851_s1 + $0x30] sm:$0xff]  ;;  %264 = vmatpush.msra.mxu0 %v247_v6  ;;  %v518_v12 = vld [vmem:[%s851_s1 + $0x60] sm:$0xff]  ;;  %240 = vst.msk [vmem:[#allocation2 + $0x10] sm:$0xff] %vm237_vm0, %v667_v8  ;;  %s219_s5 = scalar_lea.vmem %s850_s0, %s506_s30  ;;  %s209_s30 = scalar_lea.vmem [#allocation3], %s505_s25 }
  0x18   : > { %353 = vmatpush.msra.mxu3 %v520_v3  ;;  %294 = vmatpush.msra.mxu1 %v511_v7  ;;  %241 = vst.msk [vmem:[#allocation2 + $0x18] sm:$0xff] %vm237_vm0, %v667_v8  ;;  %v242_v13 = vld [vmem:[%s219_s5] sm:$0xff]  ;;  %v245_v14 = vld [vmem:[%s851_s1 + $0x8] sm:$0xff]  ;;  %s389_s3 = sshll.u32 %s209_s30, 4  ;;  %s601_s5 = sshra.s32 %s392_s4, 4  ;;  %s390_s3 = int_to_ptr.vmem [resolvable:$true] %s389_s3  ;;  %s602_s5 = int_to_ptr.hbm [resolvable:$true] %s601_s5 }
  0x19   : > { %325 = vmatpush.msra.mxu2 %v514_v4  ;;  %265 = vmatpush.msra.mxu0 %v246_v9  ;;  %v509_v15 = vld [vmem:[%s851_s1 + $0x28] sm:$0xff]  ;;  %v244_v16 = vld [vmem:[%s851_s1] sm:$0xff]  ;;  %s603_s6 = scalar_lea.hbm %s602_s5, 32  ;;  %p608_p1 = scmp.lt.s32.totalorder %s602_s5, %s852_s2 }
  0x1a   : > { %354 = vmatpush.msra.mxu3 %v519_v5  ;;  %295 = vmatpush.msra.mxu1 %v510_v10  ;;  %v508_v17 = vld [vmem:[%s851_s1 + $0x20] sm:$0xff]  ;;  %p604_p12 = scmp.ne.s32.totalorder %s602_s5, %s603_s6  ;;  %p609_p2 = scmp.lt.s32.totalorder %s607_s15, %s603_s6 }
  0x1b   : > { %326 = vmatpush.msra.mxu2 %v513_v11  ;;  %266 = vmatpush.msra.mxu0 %v245_v14 }
  0x1c   : > { %355 = vmatpush.msra.mxu3 %v518_v12  ;;  %517 = vmatmul.msk.f32.vlgmr.msra.gmra.mxu2 %vm248_vm1, %v242_v13  ;;  %v243_v18 = vld [vmem:[#allocation2] sm:$0xff]  ;;  %p605_p13 = pnand %p604_p12, %p725_p4  ;;  %p610_p3 = por %p609_p2, %p608_p1 }
  0x1d   : > { %522 = vmatmul.msk.f32.vlgmr.msra.gmra.mxu3 %vm248_vm1, %v242_v13  ;;  %296 = vmatpush.msra.mxu1 %v509_v15  ;;  %v276_v19 = vld [vmem:[#allocation2 + $0x8] sm:$0xff] }
  0x1e   : > { %267 = vmatpush.msra.mxu0 %v244_v16  ;;  %v305_v22 = vld [vmem:[#allocation2 + $0x10] sm:$0xff]  ;;  %p606_p0 = pneg %p605_p13 }
  0x1f   : > { %297 = vmatpush.msra.mxu1 %v508_v17  ;;  %507 = vmatmul.msk.f32.vlgmr.msra.gmra.mxu0 %vm248_vm1, %v242_v13  ;;  %v334_v23 = vld [vmem:[#allocation2 + $0x18] sm:$0xff] }
  0x20   : > { %512 = vmatmul.msk.f32.vlgmr.msra.gmra.mxu1 %vm248_vm1, %v242_v13  ;;  %p611_p5 = pnand %p610_p3, %p606_p0 }
  0x9c   : > { %v269_v20 = vpop.f32.mrf.mxu0 }
  0x9d   : > { %v299_v21 = vpop.f32.mrf.mxu1  ;;  %v272_v24 = vadd.f32 %v269_v20, %v243_v18 }
  0x9e   : > { %v302_v25 = vadd.f32 %v299_v21, %v276_v19 }
  0x9f   : > { %v328_v26 = vpop.f32.mrf.mxu2  ;;  %274 = vst.msk [vmem:[#allocation2] sm:$0xff] %vm237_vm0, %v272_v24 }
  0xa0   : > { %v357_v27 = vpop.f32.mrf.mxu3  ;;  %v331_v28 = vadd.f32 %v328_v26, %v305_v22  ;;  %303 = vst.msk [vmem:[#allocation2 + $0x8] sm:$0xff] %vm237_vm0, %v302_v25 }
  0xa1   : > { %v360_v29 = vadd.f32 %v357_v27, %v334_v23 }
  0xa2   : > { %332 = vst.msk [vmem:[#allocation2 + $0x10] sm:$0xff] %vm237_vm0, %v331_v28 }
  0xa3   : > { %361 = vst.msk [vmem:[#allocation2 + $0x18] sm:$0xff] %vm237_vm0, %v360_v29 }
  0xa6   : > { %v365_v30 = vld [vmem:[#allocation2] sm:$0xff] }
  0xa7   : > { %v366_v31 = vld [vmem:[#allocation2 + $0x8] sm:$0xff]  ;;  %369 = vst.msk [vmem:[%s209_s30] sm:$0xff] %vm237_vm0, %v365_v30 }
  0xa8   : > { %370 = vst.msk [vmem:[%s209_s30 + $0x8] sm:$0xff] %vm237_vm0, %v366_v31 }
  0xa9   : > { %v367_v32 = vld [vmem:[#allocation2 + $0x10] sm:$0xff] }
  0xaa   : > { %v368_v33 = vld [vmem:[#allocation2 + $0x18] sm:$0xff]  ;;  %371 = vst.msk [vmem:[%s209_s30 + $0x10] sm:$0xff] %vm237_vm0, %v367_v32 }
  0xab   : > { %372 = vst.msk [vmem:[%s209_s30 + $0x18] sm:$0xff] %vm237_vm0, %v368_v33 }
  0xac   : > { %614 = shalt.err (!%p611_p5)
}
  0xad   : > { %s668_s20 = smov 128   ;;  %s669_s23 = smov 8  }
  0xae   : > { %529 = dma.vmem_to_hbm [thread:$0]  (%p725_p4), %s390_s3, 512, %s392_s4, %s374_s12, %s668_s20, %s668_s20, %s669_s23  }
  0xaf PF: > { %p535_p6 = scmp.ge.s32.totalorder %s665_s14, 2  ;;  %s406_s24 = sand.u32 1, %s645_s9  }
  0xb0   : > { %s407_s25 = scalar_lea.sflag [#allocation4], %s406_s24 }
  0xb1   : > { %p532_p7 = pnand %p535_p6, %p732_p8 }
  0xb3   : > { %p533_p9 = pneg %p532_p7 }
  0xb5   : > { %640 = dma.done.wait (%p533_p9), %s407_s25, 512  }
  0xb6   : > { %642 = vsyncadd (%p533_p9), %s407_s25, 4294966784  ;;  %s15_s14 = sadd.s32 1, %s665_s14   ;;  %s855_s9 = smov %s649_s10 }
  0xb7   : > { %p12_p10 = scmp.ge.s32.totalorder %s15_s14, 4   ;;  %s856_s10 = smov %s653_s11 }
  0xb8   : > { %s857_s11 = smov %s738_s22  ;;  %s858_s12 = smov %s661_s13 }
  0xb9   : > { %s859_s13 = smov %s861_s17  ;;  %14 = sbr.rel (!%p12_p10) target bundleno = 4 (0x4), region = 80 }
  0xbe   :  { %413 = vsyncpa [#allocation4], 1 }
  0xbf   :  { %415 = vsyncpa [#allocation4 + $0x1], 1 }

</bundles_post_ra>
